<compile_context>
chip_gen: v7x
topology: tpu7x:2x2x1
jax: 0.10.0
libtpu: 0.0.40
codegen_flags: <defaults>
</compile_context>

<pallas_src>
import jax
import jax.numpy as jnp
from jax.experimental import pallas as pl
from jax.experimental.pallas import tpu as pltpu


def _round_up(x, m):
    return ((x + m - 1) // m) * m


def _odefunc1_kernel(beta_sref, s_ref, i_ref, g_ref, out_ref):
    # beta_sref: SMEM (1,) f32        -- scalar-prefetched parameter
    # s_ref:     VMEM (TILE_R, 128)   -- S, batch packed (sublane, lane)
    # i_ref:     VMEM (TILE_R, 128)   -- I
    # g_ref:     VMEM (TILE_R, 128)   -- integro
    # out_ref:   VMEM (3, TILE_R, 128)-- rows: dSdt, dIdt, dRdt
    S = s_ref[...]
    I = i_ref[...]
    g = g_ref[...]
    # Keep compute in the native dtype (bf16 stays bf16 on v6e/v7x); cast
    # beta down to match so nothing gets silently promoted to f32.
    beta = beta_sref[0].astype(S.dtype)

    bSI = beta * S * I

    out_ref[0] = (-bSI + g).astype(out_ref.dtype)
    out_ref[1] = (bSI - I).astype(out_ref.dtype)
    out_ref[2] = (I - g).astype(out_ref.dtype)


def odefunc1_forward(t, y, integro, beta):
    """JAX/Pallas equivalent of ODEFunc1.forward(t, y, integro).

    y: (B, 3) with state order [S, I, R]; integro: (B, 1); returns (B, 3).
    t is accepted for API parity (it does not affect the output).
    """
    del t  # unused, as in the PyTorch forward
    B = y.shape[0]
    dtype = y.dtype

    # --- pack batch densely onto (sublane, lane) = (R, 128) -----------------
    R = pl.cdiv(B, 128)
    R8 = _round_up(R, 8)                 # sublane tiling constraint
    tile_r = min(1024, R8)               # up to 1024x128 = 131072 elems/block
    if R8 // tile_r < 2 and R8 >= 16:    # keep >=2 grid steps for v7x megacore
        tile_r = _round_up(pl.cdiv(R8, 2), 8)
    r_pad = _round_up(R8, tile_r)
    b_pad = r_pad * 128

    def _pack(col):                      # (B,) -> (r_pad, 128)
        col = jnp.pad(col, (0, b_pad - B))
        return col.reshape(r_pad, 128)

    s_p = _pack(y[:, 0])                 # S
    i_p = _pack(y[:, 1])                 # I
    g_p = _pack(integro[:, 0])           # integro
    # NOTE: the unused R column of y is never moved through the kernel.

    beta_arr = jnp.asarray(beta, dtype=jnp.float32).reshape(1)

    grid_spec = pltpu.PrefetchScalarGridSpec(
        num_scalar_prefetch=1,
        grid=(r_pad // tile_r,),
        in_specs=[
            pl.BlockSpec((tile_r, 128), lambda i, beta_ref: (i, 0)),     # S
            pl.BlockSpec((tile_r, 128), lambda i, beta_ref: (i, 0)),     # I
            pl.BlockSpec((tile_r, 128), lambda i, beta_ref: (i, 0)),     # integro
        ],
        out_specs=pl.BlockSpec((3, tile_r, 128), lambda i, beta_ref: (0, i, 0)),
    )

    out_p = pl.pallas_call(
        _odefunc1_kernel,
        out_shape=jax.ShapeDtypeStruct((3, r_pad, 128), dtype),
        grid_spec=grid_spec,
        compiler_params=pltpu.CompilerParams(
            dimension_semantics=("parallel",),
        ),
    )(beta_arr, s_p, i_p, g_p)

    # Back to the PyTorch (B, 3) layout.
    out_flat = out_p.reshape(3, b_pad)[:, :B]   # (3, B)
    return jnp.transpose(out_flat)              # (B, 3)


if __name__ == "__main__":
    # Deterministic parameter init (matches nn.Parameter values in __init__).
    beta = jnp.float32(1.3)
    gamma = jnp.float32(1.0)  # unused in forward (kept for parity)
    S0 = jnp.float32(0.9)     # unused in forward (kept for parity)

    # Small deterministic inputs.
    key = jax.random.PRNGKey(0)
    k_y, k_i, k_t = jax.random.split(key, 3)
    B = 8
    y = jax.random.uniform(k_y, (B, 3), dtype=jnp.float32)        # state [S, I, R]
    integro = jax.random.uniform(k_i, (B, 1), dtype=jnp.float32)  # integral term
    t = jax.random.uniform(k_t, (), dtype=jnp.float32)            # time (unused)

    out = odefunc1_forward(t, y, integro, beta)
    out = jax.block_until_ready(out)

    # Pure-JAX reference check.
    S, I, _ = y[:, 0:1], y[:, 1:2], y[:, 2:3]
    ref = jnp.concatenate(
        [-beta * S * I + integro, beta * S * I - I, I - integro], axis=1
    )
    assert out.shape == (B, 3)
    assert jnp.allclose(out, ref, atol=1e-6, rtol=1e-6)

    print("KERNEL_OK")
</pallas_src>

<mosaic_0001>
module attributes {stable_mosaic.version = 11 : i64} {
  func.func @_odefunc1_kernel(%arg0: i32, %arg1: memref<1xf32, #tpu.memory_space<smem>>, %arg2: memref<8x128xf32, #tpu.memory_space<vmem>>, %arg3: memref<8x128xf32, #tpu.memory_space<vmem>>, %arg4: memref<8x128xf32, #tpu.memory_space<vmem>>, %arg5: memref<3x8x128xf32, #tpu.memory_space<vmem>>) attributes {dimension_semantics = [#tpu.dimension_semantics<parallel>], iteration_bounds = array<i64: 1>, scalar_prefetch = 1 : i64, scratch_operands = 0 : i64, tpu.core_type = #tpu.core_type<tc>, window_params = [{transform_indices = @transform_0, window_bounds = array<i64: 8, 128>}, {transform_indices = @transform_1, window_bounds = array<i64: 8, 128>}, {transform_indices = @transform_2, window_bounds = array<i64: 8, 128>}, {transform_indices = @transform_3, window_bounds = array<i64: 3, 8, 128>}]} {
    %c0 = arith.constant 0 : index
    %c0_0 = arith.constant 0 : index
    %0 = vector.load %arg2[%c0, %c0_0] : memref<8x128xf32, #tpu.memory_space<vmem>>, vector<8x128xf32>
    %c0_1 = arith.constant 0 : index
    %c0_2 = arith.constant 0 : index
    %1 = vector.load %arg3[%c0_1, %c0_2] : memref<8x128xf32, #tpu.memory_space<vmem>>, vector<8x128xf32>
    %c0_3 = arith.constant 0 : index
    %c0_4 = arith.constant 0 : index
    %2 = vector.load %arg4[%c0_3, %c0_4] : memref<8x128xf32, #tpu.memory_space<vmem>>, vector<8x128xf32>
    %c0_5 = arith.constant 0 : index
    %3 = memref.load %arg1[%c0_5] : memref<1xf32, #tpu.memory_space<smem>>
    %4 = vector.broadcast %3 : f32 to vector<8x128xf32>
    %5 = arith.mulf %4, %0 : vector<8x128xf32>
    %6 = arith.mulf %5, %1 : vector<8x128xf32>
    %cst = arith.constant 0.000000e+00 : f32
    %7 = vector.broadcast %cst : f32 to vector<8x128xf32>
    %8 = arith.subf %7, %6 : vector<8x128xf32>
    %9 = arith.addf %8, %2 : vector<8x128xf32>
    %c0_6 = arith.constant 0 : index
    %c0_7 = arith.constant 0 : index
    %c0_8 = arith.constant 0 : index
    %10 = vector.load %arg5[%c0_6, %c0_7, %c0_8] : memref<3x8x128xf32, #tpu.memory_space<vmem>>, vector<1x8x128xf32>
    %11 = vector.shape_cast %10 : vector<1x8x128xf32> to vector<8x128xf32>
    %12 = vector.shape_cast %9 : vector<8x128xf32> to vector<1x8x128xf32>
    tpu.vector_store %arg5[%c0_6, %c0_7, %c0_8], %12 {strides = array<i32>} : memref<3x8x128xf32, #tpu.memory_space<vmem>>, vector<1x8x128xf32>,
    %13 = arith.subf %6, %1 : vector<8x128xf32>
    %c1 = arith.constant 1 : index
    %c0_9 = arith.constant 0 : index
    %c0_10 = arith.constant 0 : index
    %14 = vector.load %arg5[%c1, %c0_9, %c0_10] : memref<3x8x128xf32, #tpu.memory_space<vmem>>, vector<1x8x128xf32>
    %15 = vector.shape_cast %14 : vector<1x8x128xf32> to vector<8x128xf32>
    %16 = vector.shape_cast %13 : vector<8x128xf32> to vector<1x8x128xf32>
    tpu.vector_store %arg5[%c1, %c0_9, %c0_10], %16 {strides = array<i32>} : memref<3x8x128xf32, #tpu.memory_space<vmem>>, vector<1x8x128xf32>,
    %17 = arith.subf %1, %2 : vector<8x128xf32>
    %c2 = arith.constant 2 : index
    %c0_11 = arith.constant 0 : index
    %c0_12 = arith.constant 0 : index
    %18 = vector.load %arg5[%c2, %c0_11, %c0_12] : memref<3x8x128xf32, #tpu.memory_space<vmem>>, vector<1x8x128xf32>
    %19 = vector.shape_cast %18 : vector<1x8x128xf32> to vector<8x128xf32>
    %20 = vector.shape_cast %17 : vector<8x128xf32> to vector<1x8x128xf32>
    tpu.vector_store %arg5[%c2, %c0_11, %c0_12], %20 {strides = array<i32>} : memref<3x8x128xf32, #tpu.memory_space<vmem>>, vector<1x8x128xf32>,
    return
  }
  func.func @transform_0(%arg0: i32, %arg1: memref<1xf32, #tpu.memory_space<smem>>) -> (i32, i32) {
    %c0_i32 = arith.constant 0 : i32
    %c0_i32_0 = arith.constant 0 : i32
    return %arg0, %c0_i32 : i32, i32
  }
  func.func @transform_1(%arg0: i32, %arg1: memref<1xf32, #tpu.memory_space<smem>>) -> (i32, i32) {
    %c0_i32 = arith.constant 0 : i32
    %c0_i32_0 = arith.constant 0 : i32
    return %arg0, %c0_i32 : i32, i32
  }
  func.func @transform_2(%arg0: i32, %arg1: memref<1xf32, #tpu.memory_space<smem>>) -> (i32, i32) {
    %c0_i32 = arith.constant 0 : i32
    %c0_i32_0 = arith.constant 0 : i32
    return %arg0, %c0_i32 : i32, i32
  }
  func.func @transform_3(%arg0: i32, %arg1: memref<1xf32, #tpu.memory_space<smem>>) -> (i32, i32, i32) {
    %c0_i32 = arith.constant 0 : i32
    %c0_i32_0 = arith.constant 0 : i32
    %c0_i32_1 = arith.constant 0 : i32
    return %c0_i32, %arg0, %c0_i32_0 : i32, i32, i32
  }
}

</mosaic_0001>

<bundles_post_ra>
// kernel: tpu_custom_call.1
= control target key start
LH: loop header
LB: loop body
LE: loop exit
PB: predicated region body
PF: predicated region fallthrough
CT: control target
= control target key end

     0   :  { %10 = vsyncpa [#allocation5], 0  ;;  %s224_s0 = inlined_call_operand.<no memory space> [shape: f32[1], index: 0, kind: input, shape index: {}]   ;;  %s225_s1 = inlined_call_operand.hbm [shape: f32[8,128], index: 1, kind: input, shape index: {}]   ;;  %s226_s2 = inlined_call_operand.hbm [shape: f32[8,128], index: 2, kind: input, shape index: {}]   ;;  %s227_s3 = inlined_call_operand.vmem [shape: f32[8,128], index: 3, kind: input, shape index: {}]   ;;  %s228_s4 = inlined_call_operand.hbm [shape: f32[3,8,128], index: 4, kind: output, shape index: {}]  }
   0x1   :  { %11 = vsyncpa [#allocation8], 0 }
   0x2   :  { %12 = vsyncpa [#allocation6], 0  ;;  %s152_s15 = smov [#allocation4]   ;;  %s153_s17 = smov [#allocation7]  }
   0x3   :  { %s19_s16 = sshll.u32 %s152_s15, 4  ;;  %s29_s18 = sshll.u32 %s153_s17, 4  ;;  %s20_s16 = int_to_ptr.vmem [resolvable:$true] %s19_s16  ;;  %s30_s18 = int_to_ptr.vmem [resolvable:$true] %s29_s18 }
   0x4   :  { %s80_s21 = scalar_lea.hbm %s225_s1, 128 }
   0x5   :  { %p81_p0 = scmp.ne.s32.totalorder %s225_s1, %s80_s21  ;;  %p84_p1 = scmp.lt.u32.totalorder %s80_s21, %s225_s1 }
   0x7   :  { %p86_p2 = pnand %p84_p1, %p81_p0 }
   0x9   :  { %89 = shalt.err (!%p86_p2)
}
   0xa   :  { %s90_s26 = scalar_lea.vmem %s20_s16, 128  ;;  %p95_p4 = scmp.lt.s32.totalorder %s20_s16, %s20_s16 }
   0xb   :  { %p91_p3 = scmp.ne.s32.totalorder %s20_s16, %s90_s26  ;;  %p96_p5 = scmp.lt.s32.totalorder %s90_s26, %s90_s26 }
   0xd   :  { %p97_p6 = por %p96_p5, %p95_p4 }
   0xf   :  { %p98_p7 = pnand %p97_p6, %p91_p3 }
  0x11   :  { %101 = shalt.err (!%p98_p7)
}
  0x12   :  { %22 = dma.hbm_to_vmem [thread:$0]  %s225_s1, 128, %s20_s16, [#allocation5]  }
  0x13   :  { %s102_s5 = scalar_lea.hbm %s226_s2, 128 }
  0x14   :  { %p103_p8 = scmp.ne.s32.totalorder %s226_s2, %s102_s5  ;;  %p106_p9 = scmp.lt.u32.totalorder %s102_s5, %s226_s2 }
  0x16   :  { %p108_p10 = pnand %p106_p9, %p103_p8 }
  0x18   :  { %111 = shalt.err (!%p108_p10)
}
  0x19   :  { %s112_s10 = scalar_lea.vmem %s30_s18, 128  ;;  %p117_p12 = scmp.lt.s32.totalorder %s30_s18, %s30_s18 }
  0x1a   :  { %p113_p11 = scmp.ne.s32.totalorder %s30_s18, %s112_s10  ;;  %p118_p13 = scmp.lt.s32.totalorder %s112_s10, %s112_s10 }
  0x1c   :  { %p119_p0 = por %p118_p13, %p117_p12 }
  0x1e   :  { %p120_p1 = pnand %p119_p0, %p113_p11 }
  0x20   :  { %123 = shalt.err (!%p120_p1)
}
  0x21   :  { %32 = dma.hbm_to_vmem [thread:$0]  %s226_s2, 128, %s30_s18, [#allocation8]  }
  0x22   :  { %146 = dma.done.wait [#allocation5], 128  }
  0x23   :  { %147 = vsyncadd [#allocation5], 4294967168 }
  0x24   :  { %148 = dma.done.wait [#allocation8], 128  }
  0x25   :  { %149 = vsyncadd [#allocation8], 4294967168  ;;  %v45_v0 = vstv %s224_s0  ;;  %v41_v1 = vld [vmem:[#allocation4] sm:$0xff]  ;;  %v42_v2 = vld [vmem:[#allocation7] sm:$0xff]  ;;  %s154_s16 = smov [#allocation9]  }
  0x26   :  { %v43_v3 = vld [vmem:[%s227_s3] sm:$0xff]  ;;  %v46_v4 = vmul.f32 %v45_v0, %v41_v1  ;;  %s62_s2 = sshll.u32 %s154_s16, 4  ;;  %s63_s2 = int_to_ptr.vmem [resolvable:$true] %s62_s2 }
  0x27   :  { %v54_v5 = vsub.f32 %v42_v2, %v43_v3  ;;  %s124_s17 = scalar_lea.vmem %s63_s2, 384  ;;  %p129_p3 = scmp.lt.s32.totalorder %s63_s2, %s63_s2 }
  0x28   :  { %v47_v6 = vmul.f32 %v46_v4, %v42_v2  ;;  %p125_p2 = scmp.ne.s32.totalorder %s63_s2, %s124_s17  ;;  %p130_p4 = scmp.lt.s32.totalorder %s124_s17, %s124_s17 }
  0x29   :  { %56 = vst [vmem:[#allocation9 + $0x10] sm:$0xff] %v54_v5 }
  0x2a   :  { %v48_v7 = vsub.f32 0.0, %v47_v6  ;;  %v51_v8 = vsub.f32 %v47_v6, %v42_v2  ;;  %p131_p5 = por %p130_p4, %p129_p3 }
  0x2c   :  { %v49_v9 = vadd.f32 %v48_v7, %v43_v3  ;;  %53 = vst [vmem:[#allocation9 + $0x8] sm:$0xff] %v51_v8  ;;  %p132_p6 = pnand %p131_p5, %p125_p2 }
  0x2e   :  { %50 = vst [vmem:[#allocation9] sm:$0xff] %v49_v9 }
  0x2f   :  { %135 = shalt.err (!%p132_p6)
}
  0x30   :  { %s136_s18 = scalar_lea.hbm %s228_s4, 384 }
  0x31   :  { %p137_p7 = scmp.ne.s32.totalorder %s228_s4, %s136_s18  ;;  %p140_p8 = scmp.lt.u32.totalorder %s136_s18, %s228_s4 }
  0x33   :  { %p142_p9 = pnand %p140_p8, %p137_p7 }
  0x35   :  { %145 = shalt.err (!%p142_p9)
}
  0x36   :  { %s155_s23 = smov 128   ;;  %s156_s24 = smov 8  }
  0x37   :  { %68 = dma.vmem_to_hbm [thread:$0]  %s63_s2, 384, %s228_s4, [#allocation6], %s155_s23, %s155_s23, %s156_s24  }
  0x38   :  { %150 = dma.done.wait [#allocation6], 384  }
  0x39   :  { %151 = vsyncadd [#allocation6], 4294966912 }
  0x3a   :  { %72 = vsyncpa [#allocation5], 1 }
  0x3b   :  { %73 = vsyncpa [#allocation8], 1 }
  0x3c   :  { %74 = vsyncpa [#allocation6], 1 }

</bundles_post_ra>
